<compile_context>
chip_gen: v7x
topology: tpu7x:2x2x1
jax: 0.10.0
libtpu: 0.0.40
codegen_flags: <defaults>
</compile_context>

<pallas_src>
import jax
import jax.numpy as jnp
import numpy as np
from jax.experimental import pallas as pl
from jax.experimental.pallas import tpu as pltpu


def _fold_bn(gamma, beta, mean, var, eps=1e-5):
    """Inference BatchNorm -> per-channel affine (scale, bias)."""
    scale = gamma / jnp.sqrt(var + eps)
    bias = beta - mean * scale
    return scale, bias                      # each (C,)


def _band_conv3x3(w_hwio, out_scale, W):
    """Fused banded matmul operand for a 3x3 SAME conv over (rows, W*Cin).

    Returns (3*W*Cin, W*Cout) with the three dy bands stacked along K:
        band[dy][wi*Cin+ci, wo*Cout+co] = w[dy, wi-wo+1, ci, co] * out_scale[co]
    for |wi-wo| <= 1 (zero otherwise): dx taps and width padding are baked in.
    """
    ws = w_hwio * out_scale[None, None, None, :]
    _, _, ci, co = w_hwio.shape
    bands = []
    for dy in range(3):
        m = jnp.zeros((W * ci, W * co), w_hwio.dtype)
        for dx in range(3):
            shift = jnp.eye(W, W, k=1 - dx, dtype=w_hwio.dtype)
            m = m + jnp.kron(shift, ws[dy, dx])
        bands.append(m)
    return jnp.concatenate(bands, axis=0)   # (3*W*Cin, W*Cout)


def resblock_pallas(x_nhwc, w1, s1, b1, w2, s2, b2, wds, sds, bds, *,
                    batch_block=None):
    # TODO(synk): stride != 1 (strided conv3x3 + strided 1x1 shortcut) is not
    # implemented; this covers the default ResBlock(stride=1) forward.
    N, H, W, Cin = x_nhwc.shape
    Cmid = w1.shape[3]
    Cout = w2.shape[3]
    f32 = jnp.float32
    bf16 = jnp.bfloat16

    # Batch elements per grid step: target ~256 rows/step (fills MXU M) but
    # keep >= 2 grid steps so both v7x TensorCores get work.
    if batch_block is None:
        target = max(1, 256 // H)
        nb = min(target, max(1, N // 2))
        while N % nb:
            nb -= 1
    else:
        nb = batch_block
    assert nb >= 1 and N % nb == 0
    Mb = nb * H

    Kin = 3 * W * Cin                 # fused K for conv1
    Kmid = 3 * W * Cmid               # fused K for conv2
    Nmid = W * Cmid                   # conv1 output lanes
    Nout = W * Cout                   # conv2 / block output lanes
    Nfused = Nmid + Nout              # conv1 + downsample fused output lanes

    # --- One-time wrapper-side weight prep (O(weights), outside the kernel) --
    wb1 = _band_conv3x3(w1.astype(f32), s1.astype(f32), W)      # (Kin, Nmid)
    wb2 = _band_conv3x3(w2.astype(f32), s2.astype(f32), W)      # (Kmid, Nout)
    # 1x1 downsample (+BN scale) as block-diagonal, placed in conv1's center
    # (dy=1) band rows, concatenated along N -> one fused conv1 matmul.
    wbd = jnp.kron(jnp.eye(W, dtype=f32),
                   wds.astype(f32) * sds.astype(f32)[None, :])  # (W*Cin, Nout)
    zero_band = jnp.zeros((W * Cin, Nout), f32)
    wbd_k = jnp.concatenate([zero_band, wbd, zero_band], axis=0)    # (Kin, Nout)
    w1_fused = jnp.concatenate([wb1, wbd_k], axis=1).astype(bf16)   # (Kin, Nfused)
    w2_fused = wb2.astype(bf16)                                     # (Kmid, Nout)

    bias1 = jnp.concatenate([jnp.tile(b1.astype(f32), W),
                             jnp.tile(bds.astype(f32), W)])[None, :]  # (1, Nfused)
    bias2 = jnp.tile(b2.astype(f32), W)[None, :]                      # (1, Nout)

    # Lane-dense 2-D layout (rows = batch*height, lanes = width*channels).
    x2d = x_nhwc.astype(f32).reshape(N * H, W * Cin)

    def kernel(x_ref, w1_ref, bias1_ref, w2_ref, b2_ref, o_ref):
        x = x_ref[...]                                   # (Mb, W*Cin) f32

        def halo_cat(a):
            # Previous / next image row via sublane roll (XLU); zero out the
            # per-image top/bottom rows -> SAME height padding and correct
            # batch-element boundaries, independent of batch_block.
            r = jax.lax.broadcasted_iota(jnp.int32, a.shape, 0) % H
            a_up = jnp.where(r != 0,
                             pltpu.roll(a, shift=1, axis=0), 0.0)       # a[i-1]
            a_dn = jnp.where(r != H - 1,
                             pltpu.roll(a, shift=Mb - 1, axis=0), 0.0)  # a[i+1]
            return jnp.concatenate([a_up, a, a_dn], axis=-1)

        # conv1 + bn1 and the 1x1 downsample + bn, fused into one matmul.
        cat1 = halo_cat(x).astype(bf16)                  # (Mb, Kin)
        f1 = jnp.dot(cat1, w1_ref[...],
                     preferred_element_type=jnp.float32) + bias1_ref[...]
        h1 = jnp.maximum(f1[:, :Nmid], 0.0)              # conv1+bn1+relu
        ident = f1[:, Nmid:]                             # downsample+bn

        # conv2 + bn2, then residual add + relu.
        cat2 = halo_cat(h1).astype(bf16)                 # (Mb, Kmid)
        o2 = jnp.dot(cat2, w2_ref[...],
                     preferred_element_type=jnp.float32) + b2_ref[...]
        o_ref[...] = jnp.maximum(o2 + ident, 0.0)

    grid_spec = pltpu.PrefetchScalarGridSpec(
        num_scalar_prefetch=0,
        grid=(N // nb,),
        in_specs=[
            pl.BlockSpec((Mb, W * Cin), lambda i: (i, 0)),
            pl.BlockSpec((Kin, Nfused), lambda i: (0, 0)),
            pl.BlockSpec((1, Nfused), lambda i: (0, 0)),
            pl.BlockSpec((Kmid, Nout), lambda i: (0, 0)),
            pl.BlockSpec((1, Nout), lambda i: (0, 0)),
        ],
        out_specs=pl.BlockSpec((Mb, Nout), lambda i: (i, 0)),
    )

    out2d = pl.pallas_call(
        kernel,
        out_shape=jax.ShapeDtypeStruct((N * H, Nout), f32),
        grid_spec=grid_spec,
        compiler_params=pltpu.CompilerParams(
            dimension_semantics=("parallel",),   # batch blocks are independent
            vmem_limit_bytes=32 * 1024 * 1024),
    )(x2d, w1_fused, bias1, w2_fused, bias2)

    return out2d.reshape(N, H, W, Cout)


def resblock_ref(x_nhwc, w1, s1, b1, w2, s2, b2, wds, sds, bds):
    def conv(x, w):
        return jax.lax.conv_general_dilated(
            x, w, window_strides=(1, 1), padding="SAME",
            dimension_numbers=("NHWC", "HWIO", "NHWC"))
    out = conv(x_nhwc, w1) * s1 + b1
    out = jnp.maximum(out, 0.0)
    out = conv(out, w2) * s2 + b2
    ident = jnp.einsum("nhwc,cd->nhwd", x_nhwc, wds) * sds + bds
    return jnp.maximum(out + ident, 0.0)


if __name__ == "__main__":
    N, Cin, H, W = 2, 4, 16, 16   # inplanes=4
    Cmid = Cout = 8               # planes=8, stride=1  (W*Cout = 128 lanes)

    key = jax.random.PRNGKey(0)
    keys = jax.random.split(key, 8)

    # PyTorch-style NCHW input, converted to NHWC for the kernel wrapper.
    x_nchw = jax.random.normal(keys[0], (N, Cin, H, W), jnp.float32)
    x_nhwc = jnp.transpose(x_nchw, (0, 2, 3, 1))

    # Conv weights (PyTorch OIHW -> HWIO).
    w1_oihw = jax.random.normal(keys[1], (Cmid, Cin, 3, 3), jnp.float32) * 0.1
    w2_oihw = jax.random.normal(keys[2], (Cout, Cmid, 3, 3), jnp.float32) * 0.1
    wds_oihw = jax.random.normal(keys[3], (Cout, Cin, 1, 1), jnp.float32) * 0.1
    w1 = jnp.transpose(w1_oihw, (2, 3, 1, 0))
    w2 = jnp.transpose(w2_oihw, (2, 3, 1, 0))
    wds = jnp.transpose(wds_oihw, (2, 3, 1, 0))[0, 0]   # (Cin, Cout)

    # TODO(synk): PyTorch training-mode BN (batch statistics) is not modeled;
    # inference (running-stats) semantics with a folded affine are used.
    def bn_params(k, C):
        k1, k2, k3, k4 = jax.random.split(k, 4)
        gamma = 1.0 + 0.1 * jax.random.normal(k1, (C,), jnp.float32)
        beta = 0.1 * jax.random.normal(k2, (C,), jnp.float32)
        mean = 0.1 * jax.random.normal(k3, (C,), jnp.float32)
        var = jnp.abs(jax.random.normal(k4, (C,), jnp.float32)) + 0.5
        return _fold_bn(gamma, beta, mean, var)

    s1, b1 = bn_params(keys[4], Cmid)
    s2, b2 = bn_params(keys[5], Cout)
    sds, bds = bn_params(keys[6], Cout)

    out = resblock_pallas(x_nhwc, w1, s1, b1, w2, s2, b2, wds, sds, bds)
    out = jax.block_until_ready(out)

    ref = resblock_ref(x_nhwc, w1, s1, b1, w2, s2, b2, wds, sds, bds)
    # bf16 weights / bf16 MXU inputs with f32 accumulation -> relaxed tolerance.
    np.testing.assert_allclose(np.asarray(out), np.asarray(ref),
                               rtol=2e-2, atol=2e-2)
    print("KERNEL_OK")
</pallas_src>

<mosaic_0001>
module attributes {stable_mosaic.version = 11 : i64} {
  func.func @kernel(%arg0: i32, %arg1: memref<16x64xf32, #tpu.memory_space<vmem>>, %arg2: memref<192x256xbf16, #tpu.memory_space<vmem>>, %arg3: memref<1x256xf32, #tpu.memory_space<vmem>>, %arg4: memref<384x128xbf16, #tpu.memory_space<vmem>>, %arg5: memref<1x128xf32, #tpu.memory_space<vmem>>, %arg6: memref<16x128xf32, #tpu.memory_space<vmem>>) attributes {dimension_semantics = [#tpu.dimension_semantics<parallel>], iteration_bounds = array<i64: 2>, scalar_prefetch = 0 : i64, scratch_operands = 0 : i64, tpu.core_type = #tpu.core_type<tc>, window_params = [{transform_indices = @transform_0, window_bounds = array<i64: 16, 64>}, {pipeline_mode = #tpu.pipeline_mode<synchronous>, transform_indices = @transform_1, window_bounds = array<i64: 192, 256>}, {pipeline_mode = #tpu.pipeline_mode<synchronous>, transform_indices = @transform_2, window_bounds = array<i64: 1, 256>}, {pipeline_mode = #tpu.pipeline_mode<synchronous>, transform_indices = @transform_3, window_bounds = array<i64: 384, 128>}, {pipeline_mode = #tpu.pipeline_mode<synchronous>, transform_indices = @transform_4, window_bounds = array<i64: 1, 128>}, {transform_indices = @transform_5, window_bounds = array<i64: 16, 128>}]} {
    %c0 = arith.constant 0 : index
    %c0_0 = arith.constant 0 : index
    %0 = vector.load %arg1[%c0, %c0_0] : memref<16x64xf32, #tpu.memory_space<vmem>>, vector<16x64xf32>
    %1 = tpu.iota {dimensions = array<i32: 0>} : vector<16x64xi32>
    %c16_i32 = arith.constant 16 : i32
    %c0_i32 = arith.constant 0 : i32
    %2 = arith.cmpi eq, %c16_i32, %c0_i32 : i32
    %c1_i32 = arith.constant 1 : i32
    %3 = arith.select %2, %c1_i32, %c16_i32 : i32
    %4 = vector.broadcast %3 : i32 to vector<16x64xi32>
    %5 = arith.remsi %1, %4 : vector<16x64xi32>
    %c0_i32_1 = arith.constant 0 : i32
    %6 = vector.broadcast %c0_i32_1 : i32 to vector<16x64xi32>
    %7 = arith.cmpi ne, %5, %6 : vector<16x64xi32>
    %c0_i32_2 = arith.constant 0 : i32
    %8 = vector.broadcast %c0_i32_2 : i32 to vector<16x64xi32>
    %9 = arith.cmpi slt, %5, %8 : vector<16x64xi32>
    %c0_i32_3 = arith.constant 0 : i32
    %10 = arith.cmpi slt, %3, %c0_i32_3 : i32
    %11 = vector.broadcast %10 : i1 to vector<16x64xi1>
    %12 = vector.broadcast %11 : vector<16x64xi1> to vector<16x64xi1>
    %13 = arith.xori %9, %12 : vector<16x64xi1>
    %14 = arith.andi %13, %7 : vector<16x64xi1>
    %15 = vector.broadcast %3 : i32 to vector<16x64xi32>
    %16 = arith.addi %5, %15 : vector<16x64xi32>
    %17 = arith.select %14, %16, %5 : vector<16x64xi1>, vector<16x64xi32>
    %c0_i32_4 = arith.constant 0 : i32
    %18 = vector.broadcast %c0_i32_4 : i32 to vector<16x64xi32>
    %19 = arith.cmpi ne, %17, %18 : vector<16x64xi32>
    %c1_i32_5 = arith.constant 1 : i32
    %20 = tpu.dynamic_rotate %0 by %c1_i32_5 dim 0 : vector<16x64xf32>, i32 -> vector<16x64xf32>
    %cst = arith.constant 0.000000e+00 : f32
    %21 = vector.broadcast %cst : f32 to vector<16x64xf32>
    %22 = arith.select %19, %20, %21 : vector<16x64xi1>, vector<16x64xf32>
    %c15_i32 = arith.constant 15 : i32
    %23 = vector.broadcast %c15_i32 : i32 to vector<16x64xi32>
    %24 = arith.cmpi ne, %17, %23 : vector<16x64xi32>
    %c15_i32_6 = arith.constant 15 : i32
    %25 = tpu.dynamic_rotate %0 by %c15_i32_6 dim 0 : vector<16x64xf32>, i32 -> vector<16x64xf32>
    %cst_7 = arith.constant 0.000000e+00 : f32
    %26 = vector.broadcast %cst_7 : f32 to vector<16x64xf32>
    %27 = arith.select %24, %25, %26 : vector<16x64xi1>, vector<16x64xf32>
    %28 = tpu.concatenate %22, %0, %27 in 1 : vector<16x64xf32>, vector<16x64xf32>, vector<16x64xf32> -> vector<16x192xf32>
    %29 = arith.truncf %28 : vector<16x192xf32> to vector<16x192xbf16>
    %c0_8 = arith.constant 0 : index
    %c0_9 = arith.constant 0 : index
    %30 = vector.load %arg2[%c0_8, %c0_9] : memref<192x256xbf16, #tpu.memory_space<vmem>>, vector<192x256xbf16>
    %cst_10 = arith.constant dense<0.000000e+00> : vector<16x256xf32>
    %31 = tpu.matmul %29, %30, %cst_10 {dimension_numbers = #tpu.dot_dimension_numbers<[1], [0], [0], [1], [0, 0, 1, 1], [], []>} : vector<16x192xbf16>, vector<192x256xbf16>, vector<16x256xf32> -> vector<16x256xf32>
    %c0_11 = arith.constant 0 : index
    %c0_12 = arith.constant 0 : index
    %32 = vector.load %arg3[%c0_11, %c0_12] : memref<1x256xf32, #tpu.memory_space<vmem>>, vector<1x256xf32>
    %33 = vector.broadcast %32 : vector<1x256xf32> to vector<16x256xf32>
    %34 = arith.addf %31, %33 : vector<16x256xf32>
    %35 = vector.extract_strided_slice %34 {offsets = [0, 0], sizes = [16, 128], strides = [1, 1]} : vector<16x256xf32> to vector<16x128xf32>
    %cst_13 = arith.constant 0.000000e+00 : f32
    %36 = vector.broadcast %cst_13 : f32 to vector<16x128xf32>
    %37 = arith.maximumf %35, %36 : vector<16x128xf32>
    %38 = vector.extract_strided_slice %34 {offsets = [0, 128], sizes = [16, 128], strides = [1, 1]} : vector<16x256xf32> to vector<16x128xf32>
    %39 = tpu.iota {dimensions = array<i32: 0>} : vector<16x128xi32>
    %c16_i32_14 = arith.constant 16 : i32
    %c0_i32_15 = arith.constant 0 : i32
    %40 = arith.cmpi eq, %c16_i32_14, %c0_i32_15 : i32
    %c1_i32_16 = arith.constant 1 : i32
    %41 = arith.select %40, %c1_i32_16, %c16_i32_14 : i32
    %42 = vector.broadcast %41 : i32 to vector<16x128xi32>
    %43 = arith.remsi %39, %42 : vector<16x128xi32>
    %c0_i32_17 = arith.constant 0 : i32
    %44 = vector.broadcast %c0_i32_17 : i32 to vector<16x128xi32>
    %45 = arith.cmpi ne, %43, %44 : vector<16x128xi32>
    %c0_i32_18 = arith.constant 0 : i32
    %46 = vector.broadcast %c0_i32_18 : i32 to vector<16x128xi32>
    %47 = arith.cmpi slt, %43, %46 : vector<16x128xi32>
    %c0_i32_19 = arith.constant 0 : i32
    %48 = arith.cmpi slt, %41, %c0_i32_19 : i32
    %49 = vector.broadcast %48 : i1 to vector<16x128xi1>
    %50 = vector.broadcast %49 : vector<16x128xi1> to vector<16x128xi1>
    %51 = arith.xori %47, %50 : vector<16x128xi1>
    %52 = arith.andi %51, %45 : vector<16x128xi1>
    %53 = vector.broadcast %41 : i32 to vector<16x128xi32>
    %54 = arith.addi %43, %53 : vector<16x128xi32>
    %55 = arith.select %52, %54, %43 : vector<16x128xi1>, vector<16x128xi32>
    %c0_i32_20 = arith.constant 0 : i32
    %56 = vector.broadcast %c0_i32_20 : i32 to vector<16x128xi32>
    %57 = arith.cmpi ne, %55, %56 : vector<16x128xi32>
    %c1_i32_21 = arith.constant 1 : i32
    %58 = tpu.dynamic_rotate %37 by %c1_i32_21 dim 0 : vector<16x128xf32>, i32 -> vector<16x128xf32>
    %cst_22 = arith.constant 0.000000e+00 : f32
    %59 = vector.broadcast %cst_22 : f32 to vector<16x128xf32>
    %60 = arith.select %57, %58, %59 : vector<16x128xi1>, vector<16x128xf32>
    %c15_i32_23 = arith.constant 15 : i32
    %61 = vector.broadcast %c15_i32_23 : i32 to vector<16x128xi32>
    %62 = arith.cmpi ne, %55, %61 : vector<16x128xi32>
    %c15_i32_24 = arith.constant 15 : i32
    %63 = tpu.dynamic_rotate %37 by %c15_i32_24 dim 0 : vector<16x128xf32>, i32 -> vector<16x128xf32>
    %cst_25 = arith.constant 0.000000e+00 : f32
    %64 = vector.broadcast %cst_25 : f32 to vector<16x128xf32>
    %65 = arith.select %62, %63, %64 : vector<16x128xi1>, vector<16x128xf32>
    %66 = tpu.concatenate %60, %37, %65 in 1 : vector<16x128xf32>, vector<16x128xf32>, vector<16x128xf32> -> vector<16x384xf32>
    %67 = arith.truncf %66 : vector<16x384xf32> to vector<16x384xbf16>
    %c0_26 = arith.constant 0 : index
    %c0_27 = arith.constant 0 : index
    %68 = vector.load %arg4[%c0_26, %c0_27] : memref<384x128xbf16, #tpu.memory_space<vmem>>, vector<384x128xbf16>
    %cst_28 = arith.constant dense<0.000000e+00> : vector<16x128xf32>
    %69 = tpu.matmul %67, %68, %cst_28 {dimension_numbers = #tpu.dot_dimension_numbers<[1], [0], [0], [1], [0, 0, 1, 1], [], []>} : vector<16x384xbf16>, vector<384x128xbf16>, vector<16x128xf32> -> vector<16x128xf32>
    %c0_29 = arith.constant 0 : index
    %c0_30 = arith.constant 0 : index
    %70 = vector.load %arg5[%c0_29, %c0_30] : memref<1x128xf32, #tpu.memory_space<vmem>>, vector<1x128xf32>
    %71 = vector.broadcast %70 : vector<1x128xf32> to vector<16x128xf32>
    %72 = arith.addf %69, %71 : vector<16x128xf32>
    %73 = arith.addf %72, %38 : vector<16x128xf32>
    %cst_31 = arith.constant 0.000000e+00 : f32
    %74 = vector.broadcast %cst_31 : f32 to vector<16x128xf32>
    %75 = arith.maximumf %73, %74 : vector<16x128xf32>
    %c0_32 = arith.constant 0 : index
    %c0_33 = arith.constant 0 : index
    %76 = vector.load %arg6[%c0_32, %c0_33] : memref<16x128xf32, #tpu.memory_space<vmem>>, vector<16x128xf32>
    tpu.vector_store %arg6[%c0_32, %c0_33], %75 {strides = array<i32>} : memref<16x128xf32, #tpu.memory_space<vmem>>, vector<16x128xf32>,
    return
  }
  func.func @transform_0(%arg0: i32) -> (i32, i32) {
    %c0_i32 = arith.constant 0 : i32
    %c0_i32_0 = arith.constant 0 : i32
    return %arg0, %c0_i32 : i32, i32
  }
  func.func @transform_1(%arg0: i32) -> (i32, i32) {
    %c0_i32 = arith.constant 0 : i32
    %c0_i32_0 = arith.constant 0 : i32
    %c0_i32_1 = arith.constant 0 : i32
    return %c0_i32, %c0_i32_0 : i32, i32
  }
  func.func @transform_2(%arg0: i32) -> (i32, i32) {
    %c0_i32 = arith.constant 0 : i32
    %c0_i32_0 = arith.constant 0 : i32
    %c0_i32_1 = arith.constant 0 : i32
    return %c0_i32, %c0_i32_0 : i32, i32
  }
  func.func @transform_3(%arg0: i32) -> (i32, i32) {
    %c0_i32 = arith.constant 0 : i32
    %c0_i32_0 = arith.constant 0 : i32
    %c0_i32_1 = arith.constant 0 : i32
    return %c0_i32, %c0_i32_0 : i32, i32
  }
  func.func @transform_4(%arg0: i32) -> (i32, i32) {
    %c0_i32 = arith.constant 0 : i32
    %c0_i32_0 = arith.constant 0 : i32
    %c0_i32_1 = arith.constant 0 : i32
    return %c0_i32, %c0_i32_0 : i32, i32
  }
  func.func @transform_5(%arg0: i32) -> (i32, i32) {
    %c0_i32 = arith.constant 0 : i32
    %c0_i32_0 = arith.constant 0 : i32
    return %arg0, %c0_i32 : i32, i32
  }
}

</mosaic_0001>

<bundles_post_ra>
// kernel: tpu_custom_call.1
= control target key start
LH: loop header
LB: loop body
LE: loop exit
PB: predicated region body
PF: predicated region fallthrough
CT: control target
= control target key end

     0   :  { %10 = vsyncpa [#allocation3], 0  ;;  %s1719_s0 = inlined_call_operand.hbm [shape: f32[32,64], index: 0, kind: input, shape index: {}]   ;;  %s1720_s1 = inlined_call_operand.hbm [shape: bf16[192,256], index: 1, kind: input, shape index: {}]   ;;  %s1721_s2 = inlined_call_operand.vmem [shape: f32[1,256], index: 2, kind: input, shape index: {}]   ;;  %s1722_s3 = inlined_call_operand.hbm [shape: bf16[384,128], index: 3, kind: input, shape index: {}]   ;;  %s1723_s4 = inlined_call_operand.vmem [shape: f32[1,128], index: 4, kind: input, shape index: {}]   ;;  %s1724_s5 = inlined_call_operand.hbm [shape: f32[32,128], index: 5, kind: output, shape index: {}]  }
   0x1   :  { %12 = vsyncpa [#allocation3 + $0x1], 0 }
   0x2   :  { %13 = vsyncpa [#allocation6], 0 }
   0x3   :  { %14 = vsyncpa [#allocation4], 0 }
   0x4   :  { %16 = vsyncpa [#allocation4 + $0x1], 0  ;;  %s1418_s18 = smov 0   ;;  %s1420_s19 = smov 0  }
   0x5   :  { %s1422_s20 = smov 0   ;;  %s1424_s21 = smov 0  }
   0x6 LB: > { %s1439_s22 = sadd.s32 4294967295, %s1372_s21   ;;  %s947_s23 = sadd.s32 4294967294, %s1372_s21   ;;  %s1372_s21 = sphi %s1424_s21, %s1748_s21   ;;  %s1368_s20 = sphi %s1422_s20, %s1747_s20   ;;  %s1364_s19 = sphi %s1420_s19, %s1746_s19   ;;  %s1360_s18 = sphi %s1418_s18, %s1745_s18  }
   0x7   : > { %p42_p0 = scmp.ne.s32.totalorder %s1364_s19, %s1360_s18  ;;  %p1725_p1 = scmp.eq.s32.totalorder %s1439_s22, 0 }
   0x8   : > { %p156_p3 = scmp.eq.s32.totalorder %s947_s23, 1  ;;  %p948_p5 = scmp.ge.s32.totalorder %s1372_s21, 1 }
   0x9   : > { %p1448_p4 = por %p1725_p1, %p42_p0  ;;  %p163_p7 = scmp.lt.s32.totalorder %s1372_s21, 3 }
   0xa   : > { %p1453_p6 = por %p156_p3, %p42_p0  ;;  %s1374_s27 = smov [#allocation5]  }
   0xb   : > { %s1728_s24 = scalar_select %p1448_p4, 1, 0 }
   0xc   : > { %s1729_s25 = scalar_select %p1453_p6, 1, 0 }
   0xd   : > { %p1458_p8 = pnand %p948_p5, %p163_p7  ;;  %s175_s28 = sshll.u32 %s1374_s27, 4  ;;  %s1462_s28 = int_to_ptr.vmem [resolvable:$true] %s175_s28 }
   0xe   : > { %s1375_s30 = smov [#allocation7]   ;;  %s1216_s9 = scalar_lea.hbm %s1720_s1, 3072 }
   0xf   : > { %p1086_p9 = pneg %p1458_p8  ;;  %s191_s6 = sshll.u32 %s1375_s30, 4  ;;  %s1473_s6 = int_to_ptr.vmem [resolvable:$true] %s191_s6 }
  0x10   : > { %p1217_p12 = scmp.ne.s32.totalorder %s1720_s1, %s1216_s9  ;;  %p1223_p5 = scmp.lt.u32.totalorder %s1216_s9, %s1720_s1 }
  0x11   : > { %p1469_p11 = pnand %p1086_p9, %p1725_p1 }
  0x13   : > { %p1218_p13 = pneg %p1469_p11 }
  0x15   : > { %p1219_p0 = pnand %p1218_p13, %p1217_p12 }
  0x17   : > { %p1220_p3 = pneg %p1219_p0 }
  0x19   : > { %p1225_p7 = pnand %p1223_p5, %p1220_p3 }
  0x1b   : > { %1228 = shalt.err (!%p1225_p7)
}
  0x1c   : > { %s1229_s14 = scalar_lea.vmem %s1462_s28, 3072  ;;  %p1237_p2 = scmp.lt.s32.totalorder %s1462_s28, %s1462_s28 }
  0x1d   : > { %p1230_p9 = scmp.ne.s32.totalorder %s1462_s28, %s1229_s14  ;;  %p1238_p12 = scmp.lt.s32.totalorder %s1229_s14, %s1229_s14 }
  0x1f   : > { %p1232_p10 = pnand %p1230_p9, %p1218_p13  ;;  %p1239_p0 = por %p1238_p12, %p1237_p2 }
  0x21   : > { %p1233_p1 = pneg %p1232_p10 }
  0x23   : > { %p1240_p6 = pnand %p1239_p0, %p1233_p1 }
  0x25   : > { %1243 = shalt.err (!%p1240_p6)
}
  0x26   : > { %s1376_s15 = smov 128   ;;  %s1377_s16 = smov 8  }
  0x27   : > { %1089 = dma.hbm_to_vmem [thread:$0]  (!%p1469_p11), %s1720_s1, 3072, %s1462_s28, [#allocation6], %s1376_s15, %s1376_s15, %s1377_s16  }
  0x28   : > { %s1244_s7 = scalar_lea.hbm %s1722_s3, 3072 }
  0x29   : > { %p1245_p1 = scmp.ne.s32.totalorder %s1722_s3, %s1244_s7  ;;  %p1251_p10 = scmp.lt.u32.totalorder %s1244_s7, %s1722_s3 }
  0x2b   : > { %p1247_p2 = pnand %p1245_p1, %p1218_p13 }
  0x2d   : > { %p1248_p6 = pneg %p1247_p2 }
  0x2f   : > { %p1253_p3 = pnand %p1251_p10, %p1248_p6 }
  0x31   : > { %1256 = shalt.err (!%p1253_p3)
}
  0x32   : > { %s1257_s28 = scalar_lea.vmem %s1473_s6, 3072  ;;  %p1265_p12 = scmp.lt.s32.totalorder %s1473_s6, %s1473_s6 }
  0x33   : > { %p1258_p5 = scmp.ne.s32.totalorder %s1473_s6, %s1257_s28  ;;  %p1266_p0 = scmp.lt.s32.totalorder %s1257_s28, %s1257_s28 }
  0x35   : > { %p1260_p7 = pnand %p1258_p5, %p1218_p13  ;;  %p1267_p1 = por %p1266_p0, %p1265_p12 }
  0x37   : > { %p1261_p9 = pneg %p1260_p7 }
  0x39   : > { %p1268_p2 = pnand %p1267_p1, %p1261_p9 }
  0x3b   : > { %1271 = shalt.err (!%p1268_p2)
}
  0x3c   : > { %s1378_s12 = smov 64   ;;  %s1379_s13 = smov 4  }
  0x3d   : > { %1092 = dma.hbm_to_vmem [thread:$0]  (!%p1469_p11), %s1722_s3, 3072, %s1473_s6, [#allocation6], %s1378_s12, %s1378_s12, %s1379_s13  }
  0x3e   : > { %s1531_s23 = sadd.s32 1, %s1372_s21   ;;  %s29_s30 = sadd.s32 1, %s1368_s20 }
  0x3f   : > { %s26_s27 = ssub.s32 %s1372_s21, %s1531_s23  ;;  %p36_p6 = scmp.ne.s32.totalorder %s1368_s20, %s1364_s19 }
  0x40   : > { %p27_p13 = scmp.eq.s32.totalorder %s26_s27, 0  ;;  %p37_p10 = scmp.eq.s32.totalorder %s1372_s21, 0 }
  0x41   : > { %p1732_p5 = scmp.eq.s32.totalorder %s1439_s22, 1  ;;  %p1103_p9 = scmp.lt.s32.totalorder %s1372_s21, 2 }
  0x42   : > { %s1540_s7 = scalar_select %p27_p13, %s1368_s20, %s29_s30  }
  0x43   : > { %p38_p3 = por %p37_p10, %p36_p6  ;;  %p1544_p7 = por %p1732_p5, %p36_p6 }
  0x44   : > { %s208_s29 = sand.u32 1, %s1368_s20   ;;  %s1021_s6 = sshll.u32 %s1372_s21, 8 }
  0x45   : > { %s1733_s8 = scalar_select %p1544_p7, 1, 0 }
  0x46   : > { %s952_s9 = sshll.u32 %s208_s29, 4  ;;  %s1554_s28 = scalar_lea.hbm %s1719_s0, %s1021_s6 }
  0x47   : > { %s212_s12 = scalar_lea.vmem [#allocation2], %s952_s9  ;;  %p1558_p11 = pnand %p1103_p9, %p38_p3 }
  0x48   : > { %s219_s13 = sshll.u32 %s212_s12, 4  ;;  %s1562_s17 = scalar_lea.sflag [#allocation3], %s208_s29  ;;  %s1556_s13 = int_to_ptr.vmem [resolvable:$true] %s219_s13 }
  0x49   : > { %s1272_s27 = scalar_lea.hbm %s1554_s28, 256  ;;  %p1274_p0 = pneg %p1558_p11 }
  0x4a   : > { %p1273_p12 = scmp.ne.s32.totalorder %s1554_s28, %s1272_s27  ;;  %s1277_s6 = scalar_lea.hbm %s1719_s0, 512 }
  0x4b   : > { %p1278_p13 = scmp.lt.u32.totalorder %s1554_s28, %s1719_s0  ;;  %p1279_p6 = scmp.lt.u32.totalorder %s1277_s6, %s1272_s27 }
  0x4c   : > { %p1275_p1 = pnand %p1274_p0, %p1273_p12  ;;  %p1281_p3 = scmp.lt.u32.totalorder %s1272_s27, %s1554_s28 }
  0x4d   : > { %p1280_p10 = por %p1279_p6, %p1278_p13 }
  0x4e   : > { %p1276_p2 = pneg %p1275_p1 }
  0x4f   : > { %p1282_p5 = por %p1281_p3, %p1280_p10 }
  0x51   : > { %p1283_p9 = pnand %p1282_p5, %p1276_p2 }
  0x53   : > { %1286 = shalt.err (!%p1283_p9)
}
  0x54   : > { %s1287_s29 = scalar_lea.vmem %s1556_s13, 256  ;;  %s1380_s12 = smov [#allocation2]  }
  0x55   : > { %p1288_p12 = scmp.ne.s32.totalorder %s1556_s13, %s1287_s29  ;;  %s1292_s30 = sshll.u32 %s1380_s12, 4  ;;  %s1293_s30 = int_to_ptr.vmem [resolvable:$false] %s1292_s30 }
  0x56   : > { %s1294_s9 = scalar_lea.vmem %s1293_s30, 512  ;;  %p1295_p4 = scmp.lt.s32.totalorder %s1556_s13, %s1293_s30 }
  0x57   : > { %p1290_p1 = pnand %p1288_p12, %p1274_p0  ;;  %p1296_p13 = scmp.lt.s32.totalorder %s1294_s9, %s1287_s29 }
  0x59   : > { %p1291_p7 = pneg %p1290_p1  ;;  %p1297_p6 = por %p1296_p13, %p1295_p4 }
  0x5b   : > { %p1298_p10 = pnand %p1297_p6, %p1291_p7 }
  0x5d   : > { %1301 = shalt.err (!%p1298_p10)
}
  0x5e   : > { %1096 = dma.hbm_to_vmem [thread:$0]  (!%p1558_p11), %s1554_s28, 256, %s1556_s13, %s1562_s17, %s1376_s15, %s1376_s15, %s1377_s16  }
  0x5f   : > { %231 = sbr.rel (%p1458_p8) target bundleno = 719 (0x2cf), region = 40  ;;  %s1596_s27 = sand.u32 (!%p1458_p8), 1, %s1364_s19  }
  0x60   : > { %s956_s6 = sshll.u32 (!%p1458_p8), %s1596_s27, 4  ;;  %s234_s10 = scalar_lea.sflag (!%p1458_p8), [#allocation3], %s1596_s27 }
  0x61   : > { %s237_s14 = scalar_lea.vmem (!%p1458_p8), [#allocation2], %s956_s6  ;;  %p1735_p4 = scmp.ne.s32.totalorder (!%p1458_p8), %s1728_s24, 0 }
  0x66   : > { %1347 = dma.done.wait (%p1735_p4), %s234_s10, 256  }
  0x67   : > { %1349 = vsyncadd (%p1735_p4), %s234_s10, 4294967040  ;;  %p1736_p7 = scmp.eq.s32.totalorder %s1439_s22, 0 }
  0x69   : > { %1351 = dma.done.wait (%p1736_p7), [#allocation6], 6144   ;;  %p1737_p8 = pmov %p1736_p7 }
  0x6a   : > { %v277_v0 = vlaneseq  ;;  %v275_v4 = vld [vmem:[%s237_s14] sm:$0xff]  ;;  %v276_v5 = vld [vmem:[%s237_s14 + $0x8] sm:$0xff]  ;;  %s1381_s24 = smov 64   ;;  %vm330_vm3 = vcmask 523264   ;;  %vm1383_vm5 = vmmov 1   ;;  %vm1384_vm7 = vmmov 0  }
  0x6b   : > { %1353 = vsyncadd (%p1737_p8), [#allocation6], 4294961152  ;;  %v307_v6 = vrot.slane %v276_v5, 7  ;;  %v316_v7 = vrot.slane %v276_v5, 1  ;;  %v1151_v8 = vpack.i.bf16 %v276_v5, %v275_v4  ;;  %v306_v9 = vrot.slane %v275_v4, 7  ;;  %v1192_v30 = vld [vmem:[#allocation7 + $0x40] sm:$0xff]  }
  0x6c   : > { %v1610_v1 = vshrl.u32 %v277_v0, 7  ;;  %v1156_v10 = vld [vmem:[#allocation5 + $0x4] ss:$8 sps:$4 sm:$0xff]   ;;  %v315_v11 = vrot.slane %v275_v4, 1  ;;  %v1158_v12 = vld [vmem:[#allocation5] ss:$8 sps:$4 sm:$0xff]   ;;  %1023 = vmatprep.subr.bf16.mxu1 %v1192_v30 }
  0x6d   : > { %1152 = vrot.lane.b32.xlu0 %v1151_v8, %s1381_s24  ;;  %494 = vmatprep.subr.bf16.mxu0 %v1156_v10  ;;  %v1159_v14 = vld [vmem:[#allocation5 + $0x14] ss:$8 sps:$4 sm:$0xff]   ;;  %v1161_v17 = vld [vmem:[#allocation5 + $0x10] ss:$8 sps:$4 sm:$0xff]   ;;  %v1162_v20 = vld [vmem:[#allocation5 + $0x24] ss:$8 sps:$4 sm:$0xff]  }
  0x6e   : > { %v279_v2 = vadd.s32 8, %v1610_v1  ;;  %vm308_vm0 = vcmp.lt.s32.totalorder %v1610_v1, 1  ;;  %vm317_vm1 = vcmp.lt.s32.totalorder %v1610_v1, 7  ;;  %495 = vmatpush1.bf16.msra.mxu0 %v1158_v12  ;;  %v1164_v23 = vld [vmem:[#allocation5 + $0x20] ss:$8 sps:$4 sm:$0xff]   ;;  %v1196_v35 = vld [vmem:[#allocation7 + $0x50] sm:$0xff]  }
  0x6f   : > { %v1621_v15 = vsel %vm308_vm0, %v306_v9, %v307_v6  ;;  %v1625_v16 = vsel %vm308_vm0, %v307_v6, %v306_v9  ;;  %v318_v18 = vsel %vm317_vm1, %v315_v11, %v316_v7  ;;  %v319_v19 = vsel %vm317_vm1, %v316_v7, %v315_v11  ;;  %496 = vmatprep.subr.bf16.mxu0 %v1159_v14  ;;  %v1165_v24 = vld [vmem:[#allocation5 + $0x34] ss:$8 sps:$4 sm:$0xff]   ;;  %v1167_v25 = vld [vmem:[#allocation5 + $0x30] ss:$8 sps:$4 sm:$0xff]   ;;  %v1168_v26 = vld [vmem:[#allocation5 + $0x44] ss:$8 sps:$4 sm:$0xff]  }
  0x70   : > { %v291_v3 = vand.u32 15, %v279_v2  ;;  %v1170_v27 = vld [vmem:[#allocation5 + $0x40] ss:$8 sps:$4 sm:$0xff]   ;;  %v1171_v28 = vld [vmem:[#allocation5 + $0x54] ss:$8 sps:$4 sm:$0xff]   ;;  %v284_v53 = vand.u32 15, %v1610_v1 }
  0x71   : > { %v1173_v29 = vld [vmem:[#allocation5 + $0x50] ss:$8 sps:$4 sm:$0xff]   ;;  %v1174_v31 = vld [vmem:[#allocation5 + $0x64] ss:$8 sps:$4 sm:$0xff]   ;;  %v1176_v36 = vld [vmem:[#allocation5 + $0x60] ss:$8 sps:$4 sm:$0xff]  }
  0x72   : > { %vm1615_vm2 = vcmp.ne.s32.totalorder %v291_v3, 15  ;;  %497 = vmatpush1.bf16.msra.mxu0 %v1161_v17  ;;  %v1193_v32 = vld [vmem:[#allocation7] sm:$0xff]   ;;  %v1194_v33 = vld [vmem:[#allocation7 + $0x48] sm:$0xff]   ;;  %v1177_v37 = vld [vmem:[#allocation5 + $0x74] ss:$8 sps:$4 sm:$0xff]   ;;  %vm1635_vm4 = vcmp.ne.s32.totalorder %v284_v53, 0 }
  0x73   : > { %v321_v21 = vsel %vm1615_vm2, %v319_v19, 0.0  ;;  %498 = vmatprep.subr.bf16.mxu0 %v1162_v20  ;;  %1024 = vmatpush3.bf16.msra.mxu1 %v1193_v32  ;;  %v1195_v34 = vld [vmem:[#allocation7 + $0x8] sm:$0xff]   ;;  %v1197_v38 = vld [vmem:[#allocation7 + $0x10] sm:$0xff]   ;;  %v1198_v40 = vld [vmem:[#allocation7 + $0x58] sm:$0xff]   ;;  %v311_v56 = vsel %vm1635_vm4, %v1625_v16, 0.0  ;;  %v1382_v4 = vmov 0.0  }
  0x74   : > { %v334_v22 = vpack.c.bf16 %v321_v21, %v318_v18  ;;  %1025 = vmatprep.subr.bf16.mxu1 %v1194_v33  ;;  %v1179_v39 = vld [vmem:[#allocation5 + $0x70] ss:$8 sps:$4 sm:$0xff]   ;;  %v1180_v41 = vld [vmem:[#allocation5 + $0x84] ss:$8 sps:$4 sm:$0xff]   ;;  %v1182_v44 = vld [vmem:[#allocation5 + $0x80] ss:$8 sps:$4 sm:$0xff]  }
  0x75   : > { %v1199_v42 = vld [vmem:[#allocation7 + $0x18] sm:$0xff]   ;;  %v1200_v43 = vld [vmem:[#allocation7 + $0x60] sm:$0xff]   ;;  %v1202_v47 = vld [vmem:[#allocation7 + $0x68] sm:$0xff]   ;;  %v363_v5 = vsub.s32 0, %v1610_v1  ;;  %s271_s13 = scalar_lea.vmem [#allocation8], %s956_s6  ;;  %s1022_s11 = sshll.u32 %s1439_s22, 8 }
  0x76   : > { %984 = vmatprep.mubr.msk.bf16.mxu0 %vm330_vm3, %v334_v22  ;;  %499 = vmatpush1.bf16.msra.mxu0 %v1164_v23  ;;  %v1183_v45 = vld [vmem:[#allocation5 + $0x94] ss:$8 sps:$4 sm:$0xff]   ;;  %v1201_v46 = vld [vmem:[#allocation7 + $0x20] sm:$0xff]   ;;  %v1185_v48 = vld [vmem:[#allocation5 + $0x90] ss:$8 sps:$4 sm:$0xff]   ;;  %s855_s17 = sshll.u32 %s271_s13, 4  ;;  %s1675_s30 = scalar_lea.hbm %s1724_s5, %s1022_s11  ;;  %s1670_s17 = int_to_ptr.vmem [resolvable:$true] %s855_s17 }
  0x77   : > { %500 = vmatprep.subr.bf16.mxu0 %v1165_v24  ;;  %1026 = vmatpush3.bf16.msra.mxu1 %v1195_v34  ;;  %v1186_v49 = vld [vmem:[#allocation5 + $0xa4] ss:$8 sps:$4 sm:$0xff]   ;;  %v1188_v50 = vld [vmem:[#allocation5 + $0xa0] ss:$8 sps:$4 sm:$0xff]   ;;  %v1189_v51 = vld [vmem:[#allocation5 + $0xb4] ss:$8 sps:$4 sm:$0xff]  }
  0x78   : > { %1027 = vmatprep.subr.bf16.mxu1 %v1196_v35  ;;  %v1191_v52 = vld [vmem:[#allocation5 + $0xb0] ss:$8 sps:$4 sm:$0xff]   ;;  %v1203_v62 = vld [vmem:[#allocation7 + $0x28] sm:$0xff]   ;;  %v359_v6 = vld [vmem:[%s1721_s2] sm:$0x3]  ;;  %s842_s9 = scalar_lea.sflag [#allocation4], %s1596_s27 }
  0x79   : > { %v1204_v63 = vld [vmem:[#allocation7 + $0x70] sm:$0xff]   ;;  %v1206_v2 = vld [vmem:[#allocation7 + $0x78] sm:$0xff]   ;;  %v364_v7 = vrot.slane %v359_v6, %v363_v5  ;;  %vm1010_vm6 = vmpackc.low %vm1383_vm5, %vm1635_vm4  ;;  %s1302_s6 = scalar_lea.vmem %s1670_s17, 256  ;;  %p1742_p0 = scmp.ne.s32.totalorder %s1733_s8, 0 }
  0x7a   : > { %501 = vmatpush1.bf16.msra.mxu0 %v1167_v25  ;;  %v1205_v0 = vld [vmem:[#allocation7 + $0x30] sm:$0xff]   ;;  %v1207_v3 = vld [vmem:[#allocation7 + $0x38] sm:$0xff]   ;;  %v1212_v32 = vld [vmem:[#allocation7 + $0xa0] sm:$0xff]   ;;  %p1303_p11 = scmp.ne.s32.totalorder %s1670_s17, %s1302_s6  ;;  %s1385_s22 = smov [#allocation8]  }
  0x7b   : > { %502 = vmatprep.subr.bf16.mxu0 %v1168_v26  ;;  %1028 = vmatpush3.bf16.msra.mxu1 %v1197_v38  ;;  %v1208_v26 = vld [vmem:[#allocation7 + $0x80] sm:$0xff]   ;;  %v1210_v30 = vld [vmem:[#allocation7 + $0x90] sm:$0xff]   ;;  %v1213_v33 = vld [vmem:[#allocation7 + $0xa8] sm:$0xff]   ;;  %s1306_s10 = sshll.u32 %s1385_s22, 4  ;;  %s1307_s10 = int_to_ptr.vmem [resolvable:$false] %s1306_s10 }
  0x7c   : > { %1029 = vmatprep.subr.bf16.mxu1 %v1198_v40  ;;  %v1214_v34 = vld [vmem:[#allocation7 + $0xb0] sm:$0xff]   ;;  %v1215_v35 = vld [vmem:[#allocation7 + $0xb8] sm:$0xff]   ;;  %vm1013_vm8 = vmpackc.low %vm1615_vm2, %vm1383_vm5  ;;  %p1304_p2 = pnand %p1303_p11, %p1742_p0  ;;  %s1308_s14 = scalar_lea.vmem %s1307_s10, 512 }
  0x7d   : > { %p1309_p5 = scmp.lt.s32.totalorder %s1670_s17, %s1307_s10  ;;  %p1310_p9 = scmp.lt.s32.totalorder %s1308_s14, %s1302_s6 }
  0x7e   : > { %503 = vmatpush1.bf16.msra.mxu0 %v1170_v27  ;;  %p1305_p3 = pneg %p1304_p2 }
  0x7f   : > { %504 = vmatprep.subr.bf16.mxu0 %v1171_v28  ;;  %1030 = vmatpush3.bf16.msra.mxu1 %v1199_v42  ;;  %v367_v42 = vsub.s32 1, %v1610_v1  ;;  %p1311_p12 = por %p1310_p9, %p1309_p5 }
  0x80   : > { %1031 = vmatprep.subr.bf16.mxu1 %v1200_v43  ;;  %v985_v43 = vld [vmem:[%s1723_s4] ss:$0 sm:$0xff] }
  0x81   : > { %p1312_p1 = pnand %p1311_p12, %p1305_p3 }
  0x82   : > { %505 = vmatpush1.bf16.msra.mxu0 %v1173_v29  ;;  %v1209_v29 = vld [vmem:[#allocation7 + $0x88] sm:$0xff]  }
  0x83   : > { %506 = vmatprep.subr.bf16.mxu0 %v1174_v31  ;;  %1032 = vmatpush3.bf16.msra.mxu1 %v1201_v46  ;;  %v1211_v31 = vld [vmem:[#allocation7 + $0x98] sm:$0xff]  }
  0x84   : > { %1033 = vmatprep.subr.bf16.mxu1 %v1202_v47 }
  0x86   : > { %507 = vmatpush1.bf16.msra.mxu0 %v1176_v36 }
  0x87   : > { %508 = vmatprep.subr.bf16.mxu0 %v1177_v37  ;;  %1034 = vmatpush3.bf16.msra.mxu1 %v1203_v62 }
  0x88   : > { %1035 = vmatprep.subr.bf16.mxu1 %v1204_v63 }
  0x8a   : > { %509 = vmatpush1.bf16.msra.mxu0 %v1179_v39 }
  0x8b   : > { %510 = vmatprep.subr.bf16.mxu0 %v1180_v41  ;;  %1036 = vmatpush3.bf16.msra.mxu1 %v1205_v0 }
  0x8c   : > { %1037 = vmatprep.subr.bf16.mxu1 %v1206_v2 }
  0x8e   : > { %511 = vmatpush1.bf16.msra.mxu0 %v1182_v44  ;;  %v368_v44 = vrot.slane %v359_v6, %v367_v42 }
  0x8f   : > { %512 = vmatprep.subr.bf16.mxu0 %v1183_v45  ;;  %1038 = vmatpush3.bf16.msra.mxu1 %v1207_v3 }
  0x90   : > { %1054 = vmatprep.subr.bf16.mxu1 %v1382_v4 }
  0x92   : > { %513 = vmatpush1.bf16.msra.mxu0 %v1185_v48 }
  0x93   : > { %514 = vmatprep.subr.bf16.mxu0 %v1186_v49 }
  0x96   : > { %515 = vmatpush1.bf16.msra.mxu0 %v1188_v50 }
  0x97   : > { %516 = vmatprep.subr.bf16.mxu0 %v1189_v51 }
  0x9a   : > { %517 = vmatpush1.bf16.msra.mxu0 %v1191_v52 }
  0xdf   : > { %v1153_v55 = vpop.permute.xlu0 %1152 }
  0xe0   : > { %v1155_v57 = vunpack.i.h.bf16 %v1153_v55  ;;  %v1154_v58 = vunpack.i.l.bf16 %v1153_v55 }
  0xe2   : > { %v331_v59 = vsel %vm330_vm3, %v311_v56, %v1154_v58  ;;  %v332_v60 = vsel %vm330_vm3, %v1621_v15, %v1155_v57 }
  0xe3   : > { %v333_v61 = vpack.c.bf16 %v332_v60, %v331_v59 }
  0xe5   : > { %527 = vmatmul.mubr.bf16.vlgmr.msra.gmra.mrb[0].mxu0 %v333_v61 }
 0x1b8   : > { %v528_v8 = vpop.f32.mrb[0].mxu0 }
 0x1b9   : > { %v529_v9 = vadd.f32 %v528_v8, %v364_v7  ;;  %v530_v10 = vpop.f32.mrb[1].mxu0 }
 0x1ba   : > { %v532_v11 = vpop.f32.mrb[2].mxu0  ;;  %v531_v46 = vadd.f32 %v530_v10, %v368_v44 }
 0x1bb   : > { %v537_v12 = vmax.f32 %v529_v9, 0.0  ;;  %v533_v14 = vadd.f32 %v532_v11, %v364_v7  ;;  %v534_v15 = vpop.f32.mrb[3].mxu0 }
 0x1bc   : > { %v535_v51 = vadd.f32 %v534_v15, %v368_v44 }
 0x1bd   : > { %v538_v16 = vmax.f32 %v533_v14, 0.0  ;;  %v539_v17 = vrot.slane %v537_v12, 7  ;;  %v545_v18 = vrot.slane %v537_v12, 1 }
 0x1bf   : > { %v540_v19 = vrot.slane %v538_v16, 7  ;;  %v546_v20 = vrot.slane %v538_v16, 1  ;;  %v552_v21 = vpack.c.bf16 %v538_v16, %v537_v12 }
 0x1c1   : > { %v547_v22 = vsel %vm317_vm1, %v545_v18, %v546_v20  ;;  %v548_v23 = vsel %vm317_vm1, %v546_v20, %v545_v18  ;;  %785 = vmatprep.mubr.bf16.mxu1 %v552_v21  ;;  %v541_v24 = vsel %vm308_vm0, %v539_v17, %v540_v19  ;;  %v542_v25 = vsel %vm308_vm0, %v540_v19, %v539_v17 }
 0x1c2   : > { %v1014_v27 = vpack.c.bf16 %v548_v23, %v547_v22  ;;  %v1011_v28 = vpack.c.bf16 %v541_v24, %v542_v25 }
 0x1c4   : > { %1012 = vmatmul.mubr.msk.bf16.vlgmr.msra.gmra.mrb[0].mxu1 %vm1010_vm6, %v1011_v28 }
 0x1c5   : > { %1055 = vmatpush3.bf16.msra.mxu1 %v1208_v26  ;;  %1070 = vmatprep.mubr.msk.bf16.mxu1 %vm1384_vm7, %v1382_v4 }
 0x1c6   : > { %1056 = vmatprep.subr.bf16.mxu1 %v1382_v4 }
 0x1c9   : > { %1057 = vmatpush3.bf16.msra.mxu1 %v1209_v29 }
 0x1ca   : > { %1058 = vmatprep.subr.bf16.mxu1 %v1382_v4 }
 0x1cd   : > { %1059 = vmatpush3.bf16.msra.mxu1 %v1210_v30 }
 0x1ce   : > { %1060 = vmatprep.subr.bf16.mxu1 %v1382_v4 }
 0x1d1   : > { %1061 = vmatpush3.bf16.msra.mxu1 %v1211_v31 }
 0x1d2   : > { %1062 = vmatprep.subr.bf16.mxu1 %v1382_v4 }
 0x1d5   : > { %1063 = vmatpush3.bf16.msra.mxu1 %v1212_v32 }
 0x1d6   : > { %1064 = vmatprep.subr.bf16.mxu1 %v1382_v4 }
 0x1d9   : > { %1065 = vmatpush3.bf16.msra.mxu1 %v1213_v33 }
 0x1da   : > { %1066 = vmatprep.subr.bf16.mxu1 %v1382_v4 }
 0x1dd   : > { %1067 = vmatpush3.bf16.msra.mxu1 %v1214_v34 }
 0x1de   : > { %1068 = vmatprep.subr.bf16.mxu1 %v1382_v4 }
 0x1e1   : > { %1069 = vmatpush3.bf16.msra.mxu1 %v1215_v35 }
 0x1e4   : > { %1071 = vmatmul.mubr.msk.bf16.vlgmr.msra.gmra.mrb[4].mxu1 %vm1013_vm8, %v1014_v27 }
 0x297   : > { %v1039_v36 = vpop.f32.mrb[0].mxu1 }
 0x298   : > { %v1040_v37 = vpop.f32.mrb[1].mxu1 }
 0x299   : > { %v1041_v38 = vadd.f32 %v1040_v37, %v1039_v36  ;;  %v1042_v39 = vpop.f32.mrb[2].mxu1 }
 0x29a   : > { %v1043_v40 = vpop.f32.mrb[3].mxu1 }
 0x29b   : > { %v1044_v41 = vadd.f32 %v1043_v40, %v1042_v39  ;;  %v788_v45 = vadd.f32 %v1041_v38, %v985_v43 }
 0x29d   : > { %v791_v49 = vadd.f32 %v1044_v41, %v985_v43 }
 0x2b7   : > { %v828_v13 = vpop.f32.mrb[4].mxu1 }
 0x2b8   : > { %v829_v47 = vadd.f32 %v828_v13, %v788_v45  ;;  %v1072_v48 = vpop.f32.mrb[5].mxu1 }
 0x2b9   : > { %v831_v50 = vpop.f32.mrb[6].mxu1 }
 0x2ba   : > { %v835_v1 = vadd.f32 %v829_v47, %v531_v46  ;;  %v832_v52 = vadd.f32 %v831_v50, %v791_v49  ;;  %v1073_v53 = vpop.f32.mrb[7].mxu1 }
 0x2bc   : > { %v837_v54 = vmax.f32 %v835_v1, 0.0  ;;  %v836_v55 = vadd.f32 %v832_v52, %v535_v51 }
 0x2be   : > { %839 = vst [vmem:[%s271_s13] sm:$0xff] %v837_v54  ;;  %v838_v56 = vmax.f32 %v836_v55, 0.0 }
 0x2c0   : > { %840 = vst [vmem:[%s271_s13 + $0x8] sm:$0xff] %v838_v56 }
 0x2c1   : > { %1315 = shalt.err (!%p1312_p1)
}
 0x2c2   : > { %s1316_s24 = scalar_lea.hbm %s1675_s30, 256  ;;  %s1320_s16 = scalar_lea.hbm %s1724_s5, 512 }
 0x2c3   : > { %p1317_p13 = scmp.ne.s32.totalorder %s1675_s30, %s1316_s24  ;;  %p1321_p4 = scmp.lt.u32.totalorder %s1675_s30, %s1724_s5 }
 0x2c4   : > { %p1322_p7 = scmp.lt.u32.totalorder %s1320_s16, %s1316_s24  ;;  %p1324_p11 = scmp.lt.u32.totalorder %s1316_s24, %s1675_s30 }
 0x2c5   : > { %p1318_p6 = pnand %p1317_p13, %p1742_p0 }
 0x2c6   : > { %p1323_p8 = por %p1322_p7, %p1321_p4 }
 0x2c7   : > { %p1319_p10 = pneg %p1318_p6 }
 0x2c8   : > { %p1325_p2 = por %p1324_p11, %p1323_p8 }
 0x2ca   : > { %p1326_p3 = pnand %p1325_p2, %p1319_p10 }
 0x2cc   : > { %1329 = shalt.err (!%p1326_p3)
}
 0x2cd   : > { %s1386_s11 = smov 128   ;;  %s1387_s29 = smov 8  }
 0x2ce   : > { %1084 = dma.vmem_to_hbm [thread:$0]  (%p1742_p0), %s1670_s17, 256, %s1675_s30, %s842_s9, %s1386_s11, %s1386_s11, %s1387_s29  }
 0x2cf PF: > { %s870_s12 = sand.u32 1, %s1360_s18   ;;  %p1743_p5 = scmp.ne.s32.totalorder %s1729_s25, 0 }
 0x2d0   : > { %p1744_p9 = scmp.ge.s32.totalorder %s1372_s21, 2  ;;  %s871_s6 = scalar_lea.sflag [#allocation4], %s870_s12 }
 0x2d2   : > { %p1098_p12 = pnand %p1744_p9, %p1743_p5 }
 0x2d4   : > { %1355 = dma.done.wait (!%p1098_p12), %s871_s6, 256  }
 0x2d5   : > { %1357 = vsyncadd (!%p1098_p12), %s871_s6, 4294967040  ;;  %p19_p1 = scmp.ge.s32.totalorder %s1531_s23, 4   ;;  %s1745_s18 = smov %s1364_s19 }
 0x2d6   : > { %s1746_s19 = smov %s1368_s20  ;;  %s1747_s20 = smov %s1540_s7 }
 0x2d7   : > { %s1748_s21 = smov %s1531_s23  ;;  %21 = sbr.rel (!%p19_p1) target bundleno = 6 (0x6), region = 93 }
 0x2de   :  { %876 = vsyncpa [#allocation3], 1 }
 0x2df   :  { %878 = vsyncpa [#allocation3 + $0x1], 1 }
 0x2e0   :  { %879 = vsyncpa [#allocation6], 1 }
 0x2e1   :  { %880 = vsyncpa [#allocation4], 1 }
 0x2e2   :  { %882 = vsyncpa [#allocation4 + $0x1], 1 }

</bundles_post_ra>
